<compile_context>
chip_gen: v7x
topology: tpu7x:2x2x1
jax: 0.10.0
libtpu: 0.0.40
codegen_flags: <defaults>
</compile_context>

<pallas_src>
import functools

import jax
import jax.numpy as jnp
from jax.experimental import pallas as pl
from jax.experimental.pallas import tpu as pltpu

LANE = 128                             # lane-dense last block dim
MAX_TILE_BYTES = 4 * 1024 * 1024       # ~4 MiB streaming tiles
TILED_VMEM_LIMIT = 40 * 1024 * 1024    # explicit; safe on v5e/v6e/v7x


def _round_up(a, b):
    return ((a + b - 1) // b) * b


def _cdiv(a, b):
    return -(-a // b)


def _sublane(itemsize):
    # dtype-specific sublane packing: f32 -> 8, bf16 -> 16, int8/fp8 -> 32
    return max(8, 32 // int(itemsize))


def _vmem_capacity_bytes():
    try:
        return int(pltpu.get_tpu_info().vmem_capacity_bytes)
    except Exception:
        return 64 * 1024 * 1024        # v7x-sized conservative fallback


# ---------------------------------------------------------------------------
# Kernels
# ---------------------------------------------------------------------------
def _fast_center_kernel(inv_n, x_ref, o_ref):
    """Whole array resident in VMEM: sum, subtract mean, store (2N traffic)."""
    xv = x_ref[...].astype(jnp.float32)
    mean = jnp.sum(xv) * inv_n                 # 1/n is a compile-time constant
    o_ref[...] = (xv - mean).astype(o_ref.dtype)


def _partial_sum_kernel(rows, tile_rows, x_ref, part_ref):
    """Per-tile (8,128) f32 partial sum: pure VPU adds, no cross-step carry."""
    xv = x_ref[...].astype(jnp.float32)
    if rows % tile_rows != 0:
        # Ragged last tile: rows past the array edge hold undefined padding.
        base = pl.program_id(0) * tile_rows
        rid = base + jax.lax.broadcasted_iota(jnp.int32, xv.shape, 0)
        xv = jnp.where(rid < rows, xv, 0.0)
    part_ref[...] = jnp.sum(xv.reshape(-1, 8, LANE), axis=0)


def _center_kernel(mean_ref, x_ref, o_ref):
    """Subtract the global mean (SMEM scalar); lane-dense unmasked stores."""
    o_ref[...] = (x_ref[...].astype(jnp.float32) - mean_ref[0]).astype(o_ref.dtype)


# ---------------------------------------------------------------------------
# Wrapper
# ---------------------------------------------------------------------------
def _as_2d(x):
    """Free (layout-preserving) reshape to a lane-friendly 2-D view."""
    n = x.size
    if n % LANE == 0:
        if x.ndim >= 2 and x.shape[-1] % LANE == 0:
            return x.reshape(-1, x.shape[-1])
        return x.reshape(-1, LANE)
    if x.ndim >= 2:
        return x.reshape(-1, x.shape[-1])
    return x.reshape(1, -1)


def centered_layer(x, *, force_tiled=False):
    """X - X.mean() over ALL elements, matching the PyTorch CenteredLayer."""
    orig_shape = x.shape
    n = x.size
    if n == 0:
        return x
    dtype = x.dtype
    itemsize = jnp.dtype(dtype).itemsize
    sub = _sublane(itemsize)
    inv_n = 1.0 / n
    vmem_cap = _vmem_capacity_bytes()

    # ---- fast path: whole array (+ f32 temporaries) fits in VMEM ----------
    x2 = _as_2d(x)
    r, c = x2.shape
    padded_elems = _round_up(r, sub) * _round_up(c, LANE)      # tiled layout
    fast_bytes = padded_elems * (2 * itemsize + 2 * 4)         # in+out+f32 temps
    if (not force_tiled) and fast_bytes <= int(0.6 * vmem_cap):
        out2 = pl.pallas_call(
            functools.partial(_fast_center_kernel, inv_n),
            out_shape=jax.ShapeDtypeStruct(x2.shape, dtype),
            compiler_params=pltpu.CompilerParams(
                vmem_limit_bytes=max(32 * 1024 * 1024, int(0.8 * vmem_cap))),
            cost_estimate=pl.CostEstimate(
                flops=2 * n, transcendentals=0,
                bytes_accessed=2 * n * itemsize),
        )(x2)
        return out2.reshape(orig_shape)

    # ---- tiled streaming path ----------------------------------------------
    padded_n = _round_up(n, LANE)
    xf = x.reshape(-1)
    if padded_n != n:
        # TODO(synk): handle the ragged lane tail in-kernel (masked load/store)
        # to avoid this extra HBM copy; only triggers when n % 128 != 0 AND the
        # array is too large for the VMEM fast path.
        xf = jnp.pad(xf, (0, padded_n - n))
    rows = padded_n // LANE
    x2 = xf.reshape(rows, LANE)

    max_tile_rows = max(sub, MAX_TILE_BYTES // (LANE * itemsize))
    # Aim for >= 8 tiles (keeps both v7x TensorCores fed on the "parallel"
    # grids) while capping tiles at ~4 MiB; keep tile_rows sublane-aligned.
    tile_rows = min(max_tile_rows, _round_up(_cdiv(rows, 8), sub))
    tile_rows = max(tile_rows, sub)
    num_tiles = _cdiv(rows, tile_rows)       # last tile may be ragged (masked)

    tile_spec = pl.BlockSpec((tile_rows, LANE), lambda i: (i, 0))

    # pass 1: independent per-tile partial sums ("parallel" -> both TCs on v7x)
    partials = pl.pallas_call(
        functools.partial(_partial_sum_kernel, rows, tile_rows),
        out_shape=jax.ShapeDtypeStruct((num_tiles * 8, LANE), jnp.float32),
        grid=(num_tiles,),
        in_specs=[tile_spec],
        out_specs=pl.BlockSpec((8, LANE), lambda i: (i, 0)),
        compiler_params=pltpu.CompilerParams(
            dimension_semantics=("parallel",),
            vmem_limit_bytes=TILED_VMEM_LIMIT),
        cost_estimate=pl.CostEstimate(
            flops=padded_n, transcendentals=0,
            bytes_accessed=padded_n * itemsize + num_tiles * 8 * LANE * 4),
    )(x2)

    # Tiny tree-reduce of the partials; exact 1/n uses the TRUE element count.
    mean = (jnp.sum(partials, dtype=jnp.float32) * jnp.float32(inv_n)).reshape(1)

    # pass 2: subtract the mean ("parallel" tiles; lane-dense unmasked stores)
    out2 = pl.pallas_call(
        _center_kernel,
        out_shape=jax.ShapeDtypeStruct((rows, LANE), dtype),
        grid=(num_tiles,),
        in_specs=[
            pl.BlockSpec(memory_space=pltpu.MemorySpace.SMEM),   # (1,) mean
            tile_spec,
        ],
        out_specs=tile_spec,
        compiler_params=pltpu.CompilerParams(
            dimension_semantics=("parallel",),
            vmem_limit_bytes=TILED_VMEM_LIMIT),
        cost_estimate=pl.CostEstimate(
            flops=padded_n, transcendentals=0,
            bytes_accessed=2 * padded_n * itemsize),
    )(mean, x2)

    out = out2.reshape(-1)
    if padded_n != n:
        out = out[:n]
    return out.reshape(orig_shape)


if __name__ == "__main__":
    centered = jax.jit(centered_layer, static_argnames=("force_tiled",))

    # Matches the module's example usage: X = torch.rand(4, 8)
    x_small = jax.random.uniform(jax.random.PRNGKey(0), (4, 8),
                                 dtype=jnp.float32)
    out_small = centered(x_small)
    jax.block_until_ready(out_small)
    ref_small = x_small - jnp.mean(x_small)
    assert out_small.shape == x_small.shape
    assert jnp.allclose(out_small, ref_small, atol=1e-5, rtol=1e-5), \
        "small mismatch vs reference"
    assert abs(float(jnp.mean(out_small))) < 1e-5, "mean not centered"

    # Larger array: still the single-pass VMEM-resident fast path (4 MiB).
    x_big = jax.random.uniform(jax.random.PRNGKey(1), (1024, 1024),
                               dtype=jnp.float32)
    out_big = centered(x_big)
    jax.block_until_ready(out_big)
    ref_big = x_big - jnp.mean(x_big)
    assert jnp.allclose(out_big, ref_big, atol=1e-5, rtol=1e-5), \
        "fast-path mismatch vs reference"

    # Force the tiled streaming path (exercises pass 1 + pass 2).
    out_tiled = centered(x_big, force_tiled=True)
    jax.block_until_ready(out_tiled)
    assert jnp.allclose(out_tiled, ref_big, atol=1e-5, rtol=1e-5), \
        "tiled mismatch vs reference"

    # Ragged shape on the tiled path (n % 128 != 0, ragged last row tile).
    x_rag = jax.random.uniform(jax.random.PRNGKey(2), (100, 33),
                               dtype=jnp.float32)
    out_rag = centered(x_rag, force_tiled=True)
    jax.block_until_ready(out_rag)
    ref_rag = x_rag - jnp.mean(x_rag)
    assert out_rag.shape == x_rag.shape
    assert jnp.allclose(out_rag, ref_rag, atol=1e-5, rtol=1e-5), \
        "ragged tiled mismatch vs reference"

    print("KERNEL_OK")
</pallas_src>

<mosaic_0001>
module attributes {stable_mosaic.version = 11 : i64} {
  func.func @_fast_center_kernel(%arg0: memref<4x8xf32, #tpu.memory_space<vmem>>, %arg1: memref<4x8xf32, #tpu.memory_space<vmem>>) attributes {dimension_semantics = [], scalar_prefetch = 0 : i64, scratch_operands = 0 : i64, tpu.core_type = #tpu.core_type<tc>} {
    %c0 = arith.constant 0 : index
    %c0_0 = arith.constant 0 : index
    %0 = vector.load %arg0[%c0, %c0_0] : memref<4x8xf32, #tpu.memory_space<vmem>>, vector<4x8xf32>
    %1 = vector.shape_cast %0 : vector<4x8xf32> to vector<1x4x8xf32>
    %cst = arith.constant dense<0.000000e+00> : vector<1xf32>
    %2 = vector.multi_reduction <add>, %1, %cst [1, 2] : vector<1x4x8xf32> to vector<1xf32>
    %3 = vector.shape_cast %2 : vector<1xf32> to vector<1x1x1xf32>
    %4 = vector.extract %3[0, 0, 0] : f32 from vector<1x1x1xf32>
    %cst_1 = arith.constant 3.125000e-02 : f32
    %5 = arith.mulf %4, %cst_1 : f32
    %6 = vector.broadcast %5 : f32 to vector<4x8xf32>
    %7 = arith.subf %0, %6 : vector<4x8xf32>
    %c0_2 = arith.constant 0 : index
    %c0_3 = arith.constant 0 : index
    %8 = vector.load %arg1[%c0_2, %c0_3] : memref<4x8xf32, #tpu.memory_space<vmem>>, vector<4x8xf32>
    tpu.vector_store %arg1[%c0_2, %c0_3], %7 {strides = array<i32>} : memref<4x8xf32, #tpu.memory_space<vmem>>, vector<4x8xf32>,
    return
  }
}

</mosaic_0001>

<bundles_post_ra>
// kernel: centered_layer.1
= control target key start
LH: loop header
LB: loop body
LE: loop exit
PB: predicated region body
PF: predicated region fallthrough
CT: control target
= control target key end

     0   :  { %6 = vsyncpa [#allocation3], 0  ;;  %s142_s0 = inlined_call_operand.hbm [shape: f32[4,8], index: 0, kind: input, shape index: {}]   ;;  %s143_s1 = inlined_call_operand.hbm [shape: f32[4,8], index: 1, kind: output, shape index: {}]  }
   0x1   :  { %7 = vsyncpa [#allocation4], 0  ;;  %s104_s6 = smov [#allocation2]   ;;  %s56_s10 = scalar_lea.hbm %s142_s0, 64 }
   0x2   :  { %s14_s7 = sshll.u32 %s104_s6, 4  ;;  %p57_p0 = scmp.ne.s32.totalorder %s142_s0, %s56_s10  ;;  %s15_s7 = int_to_ptr.vmem [resolvable:$true] %s14_s7 }
   0x3   :  { %p60_p1 = scmp.lt.u32.totalorder %s56_s10, %s142_s0 }
   0x5   :  { %p62_p2 = pnand %p60_p1, %p57_p0 }
   0x7   :  { %65 = shalt.err (!%p62_p2)
}
   0x8   :  { %s66_s15 = scalar_lea.vmem %s15_s7, 64  ;;  %p71_p4 = scmp.lt.s32.totalorder %s15_s7, %s15_s7 }
   0x9   :  { %p67_p3 = scmp.ne.s32.totalorder %s15_s7, %s66_s15  ;;  %p72_p5 = scmp.lt.s32.totalorder %s66_s15, %s66_s15 }
   0xb   :  { %p73_p6 = por %p72_p5, %p71_p4 }
   0xd   :  { %p74_p7 = pnand %p73_p6, %p67_p3 }
   0xf   :  { %77 = shalt.err (!%p74_p7)
}
  0x10   :  { %17 = dma.hbm_to_vmem [thread:$0]  %s142_s0, 64, %s15_s7, [#allocation3]  }
  0x11   :  { %100 = dma.done.wait [#allocation3], 64  }
  0x12   :  { %101 = vsyncadd [#allocation3], 4294967232  ;;  %vm22_vm0 = vcmask 60416   ;;  %v21_v0 = vld [vmem:[#allocation2] sm:$0xf]  ;;  %s105_s20 = smov [#allocation5]  }
  0x13   :  { %v23_v1 = vsel %vm22_vm0, %v21_v0, 0.0  ;;  %s43_s21 = sshll.u32 %s105_s20, 4  ;;  %s44_s21 = int_to_ptr.vmem [resolvable:$true] %s43_s21 }
  0x14   :  { %24 = vadd.xlane.f32.xlu0 %v23_v1  ;;  %s78_s0 = scalar_lea.vmem %s44_s21, 64  ;;  %p83_p9 = scmp.lt.s32.totalorder %s44_s21, %s44_s21 }
  0x15   :  { %p79_p8 = scmp.ne.s32.totalorder %s44_s21, %s78_s0  ;;  %p84_p10 = scmp.lt.s32.totalorder %s78_s0, %s78_s0 }
  0x17   :  { %p85_p11 = por %p84_p10, %p83_p9 }
  0x19   :  { %p86_p12 = pnand %p85_p11, %p79_p8 }
  0xa1   :  { %v25_v2 = vpop.xlane.xlu0 %24 }
  0xa2   :  { %v26_v3 = vrot.slane %v25_v2, 4 }
  0xa4   :  { %v27_v4 = vadd.f32 %v26_v3, %v25_v2 }
  0xa6   :  { %v28_v5 = vrot.slane %v27_v4, 2 }
  0xa8   :  { %v29_v6 = vadd.f32 %v28_v5, %v27_v4 }
  0xaa   :  { %v30_v7 = vrot.slane %v29_v6, 1 }
  0xac   :  { %v31_v8 = vadd.f32 %v30_v7, %v29_v6 }
  0xae   :  { %52 = vpush %v31_v8 }
  0xdf   :  { %s53_s18 = spop %52 }
  0xe0   :  { %s33_s19 = smul.f32 0.03125, %s53_s18 }
  0xe2   :  { %v34_v9 = vstv %s33_s19 }
  0xe3   :  { %v35_v10 = vsub.f32 %v21_v0, %v34_v9 }
  0xe5   :  { %36 = vst.msk [vmem:[#allocation5] sm:$0xf] %vm22_vm0, %v35_v10 }
  0xe6   :  { %89 = shalt.err (!%p86_p12)
}
  0xe7   :  { %s90_s24 = scalar_lea.hbm %s143_s1, 64 }
  0xe8   :  { %p91_p13 = scmp.ne.s32.totalorder %s143_s1, %s90_s24  ;;  %p94_p0 = scmp.lt.u32.totalorder %s90_s24, %s143_s1 }
  0xea   :  { %p96_p1 = pnand %p94_p0, %p91_p13 }
  0xec   :  { %99 = shalt.err (!%p96_p1)
}
  0xed   :  { %46 = dma.vmem_to_hbm [thread:$0]  %s44_s21, 64, %s143_s1, [#allocation4]  }
  0xee   :  { %102 = dma.done.wait [#allocation4], 64  }
  0xef   :  { %103 = vsyncadd [#allocation4], 4294967232 }
  0xf0   :  { %50 = vsyncpa [#allocation3], 1 }
  0xf1   :  { %51 = vsyncpa [#allocation4], 1 }

</bundles_post_ra>
